<compile_context>
chip_gen: v7x
topology: tpu7x:2x2x1
jax: 0.10.0
libtpu: 0.0.40
codegen_flags: <defaults>
</compile_context>

<pallas_src>
import functools
import math

import jax
import jax.numpy as jnp
from jax import lax
from jax.experimental import pallas as pl
from jax.experimental.pallas import tpu as pltpu

_LN_EPS = 1e-5
_SUBLANE = 8          # f32 sublane tile; batch group is padded to this
_NEG_INF = -1e30


def _round_up(x, m):
    return ((x + m - 1) // m) * m


def _layernorm(x, g, b):
    mu = jnp.mean(x, axis=-1, keepdims=True)
    var = jnp.mean((x - mu) ** 2, axis=-1, keepdims=True)
    return (x - mu) * lax.rsqrt(var + _LN_EPS) * g + b


def _gelu_exact(x):
    return 0.5 * x * (1.0 + lax.erf(x * (1.0 / math.sqrt(2.0))))


# ------------------------- simple linear kernels -------------------------

def _linear_kernel(x_ref, w_ref, b_ref, o_ref):
    o_ref[...] = (jnp.dot(x_ref[...].astype(jnp.bfloat16), w_ref[...],
                          preferred_element_type=jnp.float32) + b_ref[...])


def pallas_linear(x2d, w_bf16, b):
    m, k = x2d.shape
    n = w_bf16.shape[1]
    # Row-tile the matmul.  Pad m so a fixed tile always divides (padded rows
    # are zeros and sliced off afterwards) instead of falling back to one
    # giant un-pipelined block for awkward m.
    if m <= 512:
        m_pad = _round_up(m, _SUBLANE)
        tm = m_pad
    else:
        m_pad = _round_up(m, 256)
        tm = 512 if m_pad % 512 == 0 else 256
    if m_pad != m:
        x2d = jnp.pad(x2d, ((0, m_pad - m), (0, 0)))
    out = pl.pallas_call(
        _linear_kernel,
        out_shape=jax.ShapeDtypeStruct((m_pad, n), jnp.float32),
        grid=(m_pad // tm,),
        in_specs=[pl.BlockSpec((tm, k), lambda i: (i, 0)),
                  pl.BlockSpec((k, n), lambda i: (0, 0)),
                  pl.BlockSpec((1, n), lambda i: (0, 0))],
        out_specs=pl.BlockSpec((tm, n), lambda i: (i, 0)),
        compiler_params=pltpu.CompilerParams(
            dimension_semantics=("parallel",)),
    )(x2d, w_bf16, b.reshape(1, n))
    return out if m_pad == m else out[:m]


def _head_kernel(x_ref, g_ref, b_ref, w_ref, hb_ref, o_ref):
    y = _layernorm(x_ref[...], g_ref[...], b_ref[...])
    o_ref[...] = (jnp.dot(y.astype(jnp.bfloat16), w_ref[...],
                          preferred_element_type=jnp.float32) + hb_ref[...])


def pallas_head(x2d, g, b, w_bf16, hb):
    m, d = x2d.shape
    n = w_bf16.shape[1]
    return pl.pallas_call(
        _head_kernel,
        out_shape=jax.ShapeDtypeStruct((m, n), jnp.float32),
        grid=(1,),
        in_specs=[pl.BlockSpec((m, d), lambda i: (0, 0)),
                  pl.BlockSpec((1, d), lambda i: (0, 0)),
                  pl.BlockSpec((1, d), lambda i: (0, 0)),
                  pl.BlockSpec((d, n), lambda i: (0, 0)),
                  pl.BlockSpec((1, n), lambda i: (0, 0))],
        out_specs=pl.BlockSpec((m, n), lambda i: (0, 0)),
    )(x2d, g.reshape(1, d), b.reshape(1, d), w_bf16, hb.reshape(1, n))


# ------------------------- transformer encoder -------------------------
# Grid = (seq_tiles, layers).  The residual stream of each tile lives in a
# VMEM scratch that persists across the (inner) layer axis; per-layer weights
# stream through the BlockSpec pipeline as bf16.

def _encoder_kernel(heads, b_pad, x_ref, km_ref,
                    ln1g_ref, ln1b_ref, wqkv_ref, bqkv_ref, wo_ref, bo_ref,
                    ln2g_ref, ln2b_ref, w1_ref, b1_ref, w2_ref, b2_ref,
                    o_ref, x_sc):
    layer = pl.program_id(1)
    rows, d = x_sc.shape
    gt = rows // b_pad
    dh = d // heads

    @pl.when(layer == 0)
    def _():
        x_sc[...] = x_ref[...]

    x = x_sc[...]

    # --- ResidualAdd(PreNorm(Attention)) ---
    y = _layernorm(x, ln1g_ref[...], ln1b_ref[...])
    # Fused (q|k|v) projection: q/k/v Linear + MHA in-projection folded into
    # one weight, with the 1/sqrt(dh) scale pre-folded into the q columns.
    qkv = (jnp.dot(y.astype(jnp.bfloat16), wqkv_ref[...],
                   preferred_element_type=jnp.float32) + bqkv_ref[...])
    q = qkv[:, :d].reshape(gt, b_pad, d)
    k = qkv[:, d:2 * d].reshape(gt, b_pad, d)
    v = qkv[:, 2 * d:].reshape(gt, b_pad, d)
    km = km_ref[...].reshape(1, 1, b_pad)       # hoisted key-padding mask
    wo = wo_ref[...]

    # Block-local attention: group = patch index, softmax over the (padded)
    # batch axis.  Each head's context is folded directly into the output
    # projection (ctx_h @ Wo rows of that head) so there is no per-head
    # masked store / scratch slab and every store stays lane-dense.
    attn = jnp.zeros((rows, d), jnp.float32)
    for h in range(heads):
        sl = slice(h * dh, (h + 1) * dh)
        s = jnp.einsum('gid,gjd->gij', q[:, :, sl], k[:, :, sl],
                       preferred_element_type=jnp.float32) + km
        s = s - jnp.max(s, axis=-1, keepdims=True)
        p = jnp.exp(s)
        p = p * pl.reciprocal(jnp.sum(p, axis=-1, keepdims=True), approx=True)
        ctx = jnp.einsum('gij,gjd->gid', p, v[:, :, sl],
                         preferred_element_type=jnp.float32)
        attn = attn + jnp.dot(ctx.reshape(rows, dh).astype(jnp.bfloat16),
                              wo[sl, :], preferred_element_type=jnp.float32)
    # TODO(synk): attention / residual dropout omitted (inference mode).
    x = x + attn + bo_ref[...]

    # --- ResidualAdd(PreNorm(FeedForward)) ---
    y = _layernorm(x, ln2g_ref[...], ln2b_ref[...])
    hdn = (jnp.dot(y.astype(jnp.bfloat16), w1_ref[...],
                   preferred_element_type=jnp.float32) + b1_ref[...])
    hdn = _gelu_exact(hdn)
    ff = (jnp.dot(hdn.astype(jnp.bfloat16), w2_ref[...],
                  preferred_element_type=jnp.float32) + b2_ref[...])
    x = x + ff

    x_sc[...] = x

    @pl.when(layer == pl.num_programs(1) - 1)
    def _():
        o_ref[...] = x_sc[...]


def _encoder_vmem_limit(tr, d, hidden, b_pad):
    """Derive the scoped-VMEM limit from actual block / weight sizes."""
    wbytes = 2 * ((d * 3 * d + d * d + d * hidden + hidden * d) * 2   # bf16 W
                  + (3 * d + 2 * d + hidden + 4 * d) * 4              # biases/LN
                  + b_pad * 4)                                        # key mask
    iobytes = 4 * tr * d * 4          # double-buffered in + out x blocks
    scratch = tr * d * 4              # residual-stream scratch
    interm = tr * (3 * d + hidden + 2 * d) * 4   # qkv / hidden temporaries
    est = wbytes + iobytes + scratch + interm
    return max(32 << 20, min(int(est * 1.5) + (4 << 20), 96 << 20))


def pallas_encoder(x_flat, key_mask, enc, heads, *, seq_pad, b_pad, n_tiles):
    rows, d = x_flat.shape
    assert d % heads == 0 and rows == seq_pad * b_pad and seq_pad % n_tiles == 0
    n_layers = enc["wqkv"].shape[0]
    hidden = enc["w1"].shape[-1]
    gt = seq_pad // n_tiles
    tr = gt * b_pad                      # rows per sequence tile

    def wspec(r, c):
        # Per-layer weight slab; leading layer dim squeezed out of the kernel.
        return pl.BlockSpec((pl.Squeezed(), r, c), lambda t, l: (l, 0, 0))

    in_specs = [
        pl.BlockSpec((tr, d), lambda t, l: (t, 0)),       # x (group-major rows)
        pl.BlockSpec((1, b_pad), lambda t, l: (0, 0)),    # key-padding mask
        wspec(1, d), wspec(1, d),                         # ln1 gamma / beta
        wspec(d, 3 * d), wspec(1, 3 * d),                 # fused QKV W / b
        wspec(d, d), wspec(1, d),                         # out-proj W / b
        wspec(1, d), wspec(1, d),                         # ln2 gamma / beta
        wspec(d, hidden), wspec(1, hidden),               # FF W1 / b1
        wspec(hidden, d), wspec(1, d),                    # FF W2 / b2
    ]
    args = (x_flat, key_mask,
            enc["ln1_g"], enc["ln1_b"], enc["wqkv"], enc["bqkv"],
            enc["wo"], enc["bo"], enc["ln2_g"], enc["ln2_b"],
            enc["w1"], enc["b1"], enc["w2"], enc["b2"])
    return pl.pallas_call(
        functools.partial(_encoder_kernel, heads, b_pad),
        out_shape=jax.ShapeDtypeStruct((rows, d), jnp.float32),
        grid_spec=pltpu.PrefetchScalarGridSpec(
            num_scalar_prefetch=0,
            grid=(n_tiles, n_layers),
            in_specs=in_specs,
            out_specs=pl.BlockSpec((tr, d), lambda t, l: (t, 0)),
            scratch_shapes=[pltpu.VMEM((tr, d), jnp.float32)]),
        compiler_params=pltpu.CompilerParams(
            dimension_semantics=("parallel", "arbitrary"),
            vmem_limit_bytes=_encoder_vmem_limit(tr, d, hidden, b_pad)),
    )(*args)


# ------------------------- parameters & forward -------------------------

def init_params(key, *, ch, img_size, patch_size, emb, n_layers, heads, out_dim):
    del heads
    p = patch_size
    num_patches = (img_size // patch_size) ** 2
    seq_len = num_patches + 1
    patch_dim = p * p * ch
    hidden = 2 * emb
    keys = iter(jax.random.split(key, 16 + 24 * n_layers))

    def w(shape, scale=0.02):
        return (scale * jax.random.normal(next(keys), shape)).astype(jnp.float32)

    params = {
        "pe_w": w((patch_dim, emb)),
        "pe_b": w((emb,)),
        "cls": jax.random.uniform(next(keys), (1, 1, emb), dtype=jnp.float32),
        "head_g": jnp.ones((emb,), jnp.float32),
        "head_b": jnp.zeros((emb,), jnp.float32),
        "head_w": w((emb, out_dim)),
        "head_bias": w((out_dim,)),
    }
    # sinusoidal positional encoding (identical to the PyTorch buffer)
    position = jnp.arange(seq_len, dtype=jnp.float32)[:, None]
    div_term = jnp.exp(jnp.arange(0, emb, 2, dtype=jnp.float32)
                       * (-math.log(10000.0) / emb))
    pe = jnp.zeros((seq_len, emb), jnp.float32)
    pe = pe.at[:, 0::2].set(jnp.sin(position * div_term))
    pe = pe.at[:, 1::2].set(jnp.cos(position * div_term))
    params["pos"] = pe

    def stack(shape, init):
        return jnp.stack([init(shape) for _ in range(n_layers)], axis=0)

    params.update({
        "ln1_g": stack((1, emb), lambda s: jnp.ones(s, jnp.float32)),
        "ln1_b": stack((1, emb), lambda s: jnp.zeros(s, jnp.float32)),
        "wq": stack((emb, emb), w), "wk": stack((emb, emb), w), "wv": stack((emb, emb), w),
        "wiq": stack((emb, emb), w), "wik": stack((emb, emb), w), "wiv": stack((emb, emb), w),
        "biq": stack((1, emb), w), "bik": stack((1, emb), w), "biv": stack((1, emb), w),
        "wo": stack((emb, emb), w), "bo": stack((1, emb), w),
        "ln2_g": stack((1, emb), lambda s: jnp.ones(s, jnp.float32)),
        "ln2_b": stack((1, emb), lambda s: jnp.zeros(s, jnp.float32)),
        "w1": stack((emb, hidden), w), "b1": stack((1, hidden), w),
        "w2": stack((hidden, emb), w), "b2": stack((1, emb), w),
    })
    return params


def fold_encoder_params(params, heads):
    """Fold q/k/v Linear into the MHA in-projection and fuse into one QKV."""
    d = params["wq"].shape[-1]
    dh = d // heads
    scale = 1.0 / math.sqrt(dh)
    wq = jnp.einsum('lij,ljk->lik', params["wq"], params["wiq"]) * scale
    wk = jnp.einsum('lij,ljk->lik', params["wk"], params["wik"])
    wv = jnp.einsum('lij,ljk->lik', params["wv"], params["wiv"])
    bq = params["biq"] * scale
    return {
        "ln1_g": params["ln1_g"], "ln1_b": params["ln1_b"],
        "wqkv": jnp.concatenate([wq, wk, wv], axis=-1).astype(jnp.bfloat16),
        "bqkv": jnp.concatenate([bq, params["bik"], params["biv"]], axis=-1),
        "wo": params["wo"].astype(jnp.bfloat16), "bo": params["bo"],
        "ln2_g": params["ln2_g"], "ln2_b": params["ln2_b"],
        "w1": params["w1"].astype(jnp.bfloat16), "b1": params["b1"],
        "w2": params["w2"].astype(jnp.bfloat16), "b2": params["b2"],
    }


def vit_forward(img, params, *, patch_size, heads):
    b, c, hgt, wdt = img.shape
    p = patch_size
    hh, ww = hgt // p, wdt // p
    emb = params["pe_w"].shape[1]
    n_patches = hh * ww
    seq = n_patches + 1

    # Rearrange 'b c (h p1) (w p2) -> b (h w) (p1 p2 c)'   (glue)
    x = img.reshape(b, c, hh, p, ww, p)
    x = jnp.transpose(x, (0, 2, 4, 3, 5, 1))
    x = x.reshape(b * n_patches, p * p * c)

    # Patch-embedding linear (Pallas, bf16 weights / f32 accumulation)
    x = pallas_linear(x, params["pe_w"].astype(jnp.bfloat16),
                      params["pe_b"]).reshape(b, n_patches, emb)

    # cls token + positional encoding (glue)
    cls = jnp.broadcast_to(params["cls"], (b, 1, emb))
    x = jnp.concatenate([cls, x], axis=1)
    x = x + params["pos"][None, :seq, :]
    # TODO(synk): positional-encoding dropout omitted (inference mode).

    # nn.MultiheadAttention (batch_first=False) attends over the *batch* axis,
    # one independent group per patch index.  Re-layout to group-major rows:
    #  * batch padded to the sublane tile (8) -- or to 128 when large so the
    #    per-group softmax/matmuls are lane-dense;
    #  * seq (group) axis padded so the encoder row tile tr = gt*b_pad is big
    #    (~1024 rows) -> few grid steps, weights streamed only n_tiles times.
    # Padded rows carry garbage but are block-isolated and dropped at the end.
    b_pad = _round_up(b, 128 if b > 64 else _SUBLANE)
    target_tr = 1024
    gt = max(1, min(seq, target_tr // max(b_pad, 1)))
    n_tiles = -(-seq // gt)
    # NOTE: on v7x (2 TensorCores) real-sized seq gives n_tiles >= 2 so the
    # "parallel" tile axis shards across both cores; single-TC chips benefit
    # from the minimal tile count chosen here.
    seq_pad = n_tiles * gt

    xg = jnp.transpose(x, (1, 0, 2))                    # (seq, b, emb)
    xg = jnp.pad(xg, ((0, seq_pad - seq), (0, b_pad - b), (0, 0)))
    x_flat = xg.reshape(seq_pad * b_pad, emb)
    key_mask = jnp.where(jnp.arange(b_pad) < b, 0.0, _NEG_INF)
    key_mask = key_mask.astype(jnp.float32).reshape(1, b_pad)

    enc = fold_encoder_params(params, heads)
    x_flat = pallas_encoder(x_flat, key_mask, enc, heads,
                            seq_pad=seq_pad, b_pad=b_pad, n_tiles=n_tiles)

    cls_out = x_flat.reshape(seq_pad, b_pad, emb)[0, :b, :]
    return pallas_head(cls_out, params["head_g"], params["head_b"],
                       params["head_w"].astype(jnp.bfloat16),
                       params["head_bias"])


if __name__ == "__main__":
    B, CH, IMG, PATCH = 2, 3, 16, 8
    EMB, LAYERS, HEADS, OUT = 128, 2, 4, 10

    key = jax.random.PRNGKey(0)
    pkey, xkey = jax.random.split(key)
    params = init_params(pkey, ch=CH, img_size=IMG, patch_size=PATCH,
                         emb=EMB, n_layers=LAYERS, heads=HEADS, out_dim=OUT)
    img = jax.random.normal(xkey, (B, CH, IMG, IMG), dtype=jnp.float32)

    out = vit_forward(img, params, patch_size=PATCH, heads=HEADS)
    out = jax.block_until_ready(out)
    assert out.shape == (B, OUT) and out.dtype == jnp.float32
    print("KERNEL_OK")
</pallas_src>

<mosaic_0001>
module attributes {stable_mosaic.version = 11 : i64} {
  func.func @_linear_kernel(%arg0: i32, %arg1: memref<8x192xf32, #tpu.memory_space<vmem>>, %arg2: memref<192x128xbf16, #tpu.memory_space<vmem>>, %arg3: memref<1x128xf32, #tpu.memory_space<vmem>>, %arg4: memref<8x128xf32, #tpu.memory_space<vmem>>) attributes {dimension_semantics = [#tpu.dimension_semantics<parallel>], iteration_bounds = array<i64: 1>, scalar_prefetch = 0 : i64, scratch_operands = 0 : i64, tpu.core_type = #tpu.core_type<tc>, window_params = [{transform_indices = @transform_0, window_bounds = array<i64: 8, 192>}, {pipeline_mode = #tpu.pipeline_mode<synchronous>, transform_indices = @transform_1, window_bounds = array<i64: 192, 128>}, {pipeline_mode = #tpu.pipeline_mode<synchronous>, transform_indices = @transform_2, window_bounds = array<i64: 1, 128>}, {transform_indices = @transform_3, window_bounds = array<i64: 8, 128>}]} {
    %c0 = arith.constant 0 : index
    %c0_0 = arith.constant 0 : index
    %0 = vector.load %arg1[%c0, %c0_0] : memref<8x192xf32, #tpu.memory_space<vmem>>, vector<8x192xf32>
    %1 = arith.truncf %0 : vector<8x192xf32> to vector<8x192xbf16>
    %c0_1 = arith.constant 0 : index
    %c0_2 = arith.constant 0 : index
    %2 = vector.load %arg2[%c0_1, %c0_2] : memref<192x128xbf16, #tpu.memory_space<vmem>>, vector<192x128xbf16>
    %cst = arith.constant dense<0.000000e+00> : vector<8x128xf32>
    %3 = tpu.matmul %1, %2, %cst {dimension_numbers = #tpu.dot_dimension_numbers<[1], [0], [0], [1], [0, 0, 1, 1], [], []>} : vector<8x192xbf16>, vector<192x128xbf16>, vector<8x128xf32> -> vector<8x128xf32>
    %c0_3 = arith.constant 0 : index
    %c0_4 = arith.constant 0 : index
    %4 = vector.load %arg3[%c0_3, %c0_4] : memref<1x128xf32, #tpu.memory_space<vmem>>, vector<1x128xf32>
    %5 = vector.broadcast %4 : vector<1x128xf32> to vector<8x128xf32>
    %6 = arith.addf %3, %5 : vector<8x128xf32>
    %c0_5 = arith.constant 0 : index
    %c0_6 = arith.constant 0 : index
    %7 = vector.load %arg4[%c0_5, %c0_6] : memref<8x128xf32, #tpu.memory_space<vmem>>, vector<8x128xf32>
    tpu.vector_store %arg4[%c0_5, %c0_6], %6 {strides = array<i32>} : memref<8x128xf32, #tpu.memory_space<vmem>>, vector<8x128xf32>,
    return
  }
  func.func @transform_0(%arg0: i32) -> (i32, i32) {
    %c0_i32 = arith.constant 0 : i32
    %c0_i32_0 = arith.constant 0 : i32
    return %arg0, %c0_i32 : i32, i32
  }
  func.func @transform_1(%arg0: i32) -> (i32, i32) {
    %c0_i32 = arith.constant 0 : i32
    %c0_i32_0 = arith.constant 0 : i32
    %c0_i32_1 = arith.constant 0 : i32
    return %c0_i32, %c0_i32_0 : i32, i32
  }
  func.func @transform_2(%arg0: i32) -> (i32, i32) {
    %c0_i32 = arith.constant 0 : i32
    %c0_i32_0 = arith.constant 0 : i32
    %c0_i32_1 = arith.constant 0 : i32
    return %c0_i32, %c0_i32_0 : i32, i32
  }
  func.func @transform_3(%arg0: i32) -> (i32, i32) {
    %c0_i32 = arith.constant 0 : i32
    %c0_i32_0 = arith.constant 0 : i32
    return %arg0, %c0_i32 : i32, i32
  }
}

</mosaic_0001>

<bundles_post_ra>
// kernel: tpu_custom_call.1
= control target key start
LH: loop header
LB: loop body
LE: loop exit
PB: predicated region body
PF: predicated region fallthrough
CT: control target
= control target key end

     0   :  { %8 = vsyncpa [#allocation3], 0  ;;  %s386_s0 = inlined_call_operand.hbm [shape: f32[8,192], index: 0, kind: input, shape index: {}]   ;;  %s387_s1 = inlined_call_operand.hbm [shape: bf16[192,128], index: 1, kind: input, shape index: {}]   ;;  %s388_s2 = inlined_call_operand.vmem [shape: f32[1,128], index: 2, kind: input, shape index: {}]   ;;  %s389_s3 = inlined_call_operand.hbm [shape: f32[8,128], index: 3, kind: output, shape index: {}]  }
   0x1   :  { %9 = vsyncpa [#allocation6], 0 }
   0x2   :  { %10 = vsyncpa [#allocation4], 0  ;;  %s314_s12 = smov [#allocation2]   ;;  %s315_s14 = smov [#allocation5]  }
   0x3   :  { %s17_s13 = sshll.u32 %s314_s12, 4  ;;  %s26_s15 = sshll.u32 %s315_s14, 4  ;;  %s18_s13 = int_to_ptr.vmem [resolvable:$true] %s17_s13  ;;  %s340_s15 = int_to_ptr.vmem [resolvable:$true] %s26_s15 }
   0x4   :  { %s242_s18 = scalar_lea.hbm %s386_s0, 256 }
   0x5   :  { %p243_p0 = scmp.ne.s32.totalorder %s386_s0, %s242_s18  ;;  %p246_p1 = scmp.lt.u32.totalorder %s242_s18, %s386_s0 }
   0x7   :  { %p248_p2 = pnand %p246_p1, %p243_p0 }
   0x9   :  { %251 = shalt.err (!%p248_p2)
}
   0xa   :  { %s252_s23 = scalar_lea.vmem %s18_s13, 256  ;;  %p257_p4 = scmp.lt.s32.totalorder %s18_s13, %s18_s13 }
   0xb   :  { %p253_p3 = scmp.ne.s32.totalorder %s18_s13, %s252_s23  ;;  %p258_p5 = scmp.lt.s32.totalorder %s252_s23, %s252_s23 }
   0xd   :  { %p259_p6 = por %p258_p5, %p257_p4 }
   0xf   :  { %p260_p7 = pnand %p259_p6, %p253_p3 }
  0x11   :  { %263 = shalt.err (!%p260_p7)
}
  0x12   :  { %20 = dma.hbm_to_vmem [thread:$0]  %s386_s0, 256, %s18_s13, [#allocation3]  }
  0x13   :  { %s264_s28 = scalar_lea.hbm %s387_s1, 1536 }
  0x14   :  { %p265_p8 = scmp.ne.s32.totalorder %s387_s1, %s264_s28  ;;  %p268_p9 = scmp.lt.u32.totalorder %s264_s28, %s387_s1 }
  0x16   :  { %p270_p10 = pnand %p268_p9, %p265_p8 }
  0x18   :  { %273 = shalt.err (!%p270_p10)
}
  0x19   :  { %s274_s6 = scalar_lea.vmem %s340_s15, 1536  ;;  %p279_p12 = scmp.lt.s32.totalorder %s340_s15, %s340_s15 }
  0x1a   :  { %p275_p11 = scmp.ne.s32.totalorder %s340_s15, %s274_s6  ;;  %p280_p13 = scmp.lt.s32.totalorder %s274_s6, %s274_s6 }
  0x1c   :  { %p281_p0 = por %p280_p13, %p279_p12 }
  0x1e   :  { %p282_p1 = pnand %p281_p0, %p275_p11 }
  0x20   :  { %285 = shalt.err (!%p282_p1)
}
  0x21   :  { %s316_s0 = smov 64   ;;  %s317_s7 = smov 4  }
  0x22   :  { %32 = dma.hbm_to_vmem [thread:$0]  %s387_s1, 1536, %s340_s15, [#allocation6], %s316_s0, %s316_s0, %s317_s7  }
  0x23   :  { %308 = dma.done.wait [#allocation3], 256  }
  0x24   :  { %309 = vsyncadd [#allocation3], 4294967040 }
  0x25   :  { %310 = dma.done.wait [#allocation6], 1536  }
  0x26   :  { %311 = vsyncadd [#allocation6], 4294965760  ;;  %v318_v0 = vmov 0   ;;  %v230_v1 = vld [vmem:[#allocation5] sm:$0xff]   ;;  %v231_v2 = vld [vmem:[#allocation5 + $0x8] sm:$0xff]   ;;  %vm149_vm0 = vcmask 523264  }
  0x27   :  { %153 = vmatprep.subr.bf16.mxu0 %v318_v0  ;;  %v232_v3 = vld [vmem:[#allocation5 + $0x10] sm:$0xff]   ;;  %v233_v4 = vld [vmem:[#allocation5 + $0x18] sm:$0xff]   ;;  %v234_v7 = vld [vmem:[#allocation5 + $0x20] sm:$0xff]   ;;  %s319_s11 = smov [#allocation7]  }
  0x28   :  { %154 = vmatpush1.bf16.msra.mxu0 %v230_v1  ;;  %v43_v5 = vld [vmem:[#allocation2 + $0x8] sm:$0xff]  ;;  %v235_v8 = vld [vmem:[#allocation5 + $0x28] sm:$0xff]   ;;  %v236_v9 = vld [vmem:[#allocation5 + $0x30] sm:$0xff]   ;;  %s200_s12 = sshll.u32 %s319_s11, 4  ;;  %s201_s12 = int_to_ptr.vmem [resolvable:$true] %s200_s12 }
  0x29   :  { %155 = vmatprep.subr.bf16.mxu0 %v318_v0  ;;  %v45_v6 = vpack.c.bf16 %v43_v5, %v43_v5  ;;  %v237_v10 = vld [vmem:[#allocation5 + $0x38] sm:$0xff]   ;;  %v238_v11 = vld [vmem:[#allocation5 + $0x40] sm:$0xff]   ;;  %v239_v12 = vld [vmem:[#allocation5 + $0x48] sm:$0xff]   ;;  %s286_s13 = scalar_lea.vmem %s201_s12, 128  ;;  %p291_p3 = scmp.lt.s32.totalorder %s201_s12, %s201_s12 }
  0x2a   :  { %v240_v13 = vld [vmem:[#allocation5 + $0x50] sm:$0xff]   ;;  %v241_v14 = vld [vmem:[#allocation5 + $0x58] sm:$0xff]   ;;  %p287_p2 = scmp.ne.s32.totalorder %s201_s12, %s286_s13  ;;  %p292_p4 = scmp.lt.s32.totalorder %s286_s13, %s286_s13 }
  0x2b   :  { %223 = vmatprep.mubr.msk.bf16.mxu0 %vm149_vm0, %v45_v6  ;;  %v42_v15 = vld [vmem:[#allocation2] sm:$0xff] }
  0x2c   :  { %156 = vmatpush1.bf16.msra.mxu0 %v231_v2  ;;  %v44_v16 = vpack.c.bf16 %v42_v15, %v42_v15  ;;  %v210_v17 = vld [vmem:[%s388_s2] ss:$0 sm:$0xff]  ;;  %p293_p5 = por %p292_p4, %p291_p3 }
  0x2d   :  { %157 = vmatprep.subr.bf16.mxu0 %v318_v0 }
  0x2e   :  { %p294_p6 = pnand %p293_p5, %p287_p2 }
  0x30   :  { %158 = vmatpush1.bf16.msra.mxu0 %v232_v3 }
  0x31   :  { %159 = vmatprep.subr.bf16.mxu0 %v318_v0 }
  0x34   :  { %160 = vmatpush1.bf16.msra.mxu0 %v233_v4 }
  0x35   :  { %161 = vmatprep.subr.bf16.mxu0 %v318_v0 }
  0x38   :  { %162 = vmatpush1.bf16.msra.mxu0 %v234_v7 }
  0x39   :  { %163 = vmatprep.subr.bf16.mxu0 %v318_v0 }
  0x3c   :  { %164 = vmatpush1.bf16.msra.mxu0 %v235_v8 }
  0x3d   :  { %165 = vmatprep.subr.bf16.mxu0 %v318_v0 }
  0x40   :  { %166 = vmatpush1.bf16.msra.mxu0 %v236_v9 }
  0x41   :  { %167 = vmatprep.subr.bf16.mxu0 %v318_v0 }
  0x44   :  { %168 = vmatpush1.bf16.msra.mxu0 %v237_v10 }
  0x45   :  { %169 = vmatprep.subr.bf16.mxu0 %v318_v0 }
  0x48   :  { %170 = vmatpush1.bf16.msra.mxu0 %v238_v11 }
  0x49   :  { %171 = vmatprep.subr.bf16.mxu0 %v318_v0 }
  0x4c   :  { %172 = vmatpush1.bf16.msra.mxu0 %v239_v12 }
  0x4d   :  { %173 = vmatprep.subr.bf16.mxu0 %v318_v0 }
  0x50   :  { %174 = vmatpush1.bf16.msra.mxu0 %v240_v13 }
  0x51   :  { %175 = vmatprep.subr.bf16.mxu0 %v318_v0 }
  0x54   :  { %176 = vmatpush1.bf16.msra.mxu0 %v241_v14 }
  0x57   :  { %186 = vmatmul.mubr.bf16.vlgmr.msra.gmra.mrb[0].mxu0 %v44_v16 }
 0x12a   :  { %v187_v18 = vpop.f32.mrb[0].mxu0 }
 0x12b   :  { %v188_v19 = vadd.f32 %v210_v17, %v187_v18  ;;  %v189_v20 = vpop.f32.mrb[1].mxu0 }
 0x12c   :  { %v190_v21 = vpop.f32.mrb[2].mxu0 }
 0x12d   :  { %193 = vst [vmem:[#allocation7] sm:$0xff] %v188_v19  ;;  %v191_v22 = vpop.f32.mrb[3].mxu0 }
 0x12e   :  { %297 = shalt.err (!%p294_p6)
}
 0x12f   :  { %s298_s2 = scalar_lea.hbm %s389_s3, 128 }
 0x130   :  { %p299_p7 = scmp.ne.s32.totalorder %s389_s3, %s298_s2  ;;  %p302_p8 = scmp.lt.u32.totalorder %s298_s2, %s389_s3 }
 0x132   :  { %p304_p9 = pnand %p302_p8, %p299_p7 }
 0x134   :  { %307 = shalt.err (!%p304_p9)
}
 0x135   :  { %203 = dma.vmem_to_hbm [thread:$0]  %s201_s12, 128, %s389_s3, [#allocation4]  }
 0x136   :  { %312 = dma.done.wait [#allocation4], 128  }
 0x137   :  { %313 = vsyncadd [#allocation4], 4294967168 }
 0x138   :  { %207 = vsyncpa [#allocation3], 1 }
 0x139   :  { %208 = vsyncpa [#allocation6], 1 }
 0x13a   :  { %209 = vsyncpa [#allocation4], 1 }

</bundles_post_ra>
